<compile_context>
chip_gen: v7x
topology: tpu7x:2x2x1
jax: 0.10.0
libtpu: 0.0.40
codegen_flags: <defaults>
</compile_context>

<pallas_src>
import functools

import jax
import jax.numpy as jnp
from jax import lax
from jax.experimental import pallas as pl
from jax.experimental.pallas import tpu as pltpu

LANE = 128
_VMEM_LIMIT = 64 * 1024 * 1024  # explicit scoped-VMEM cap; plenty of headroom for tiles


def _round_up(x, m):
    return (x + m - 1) // m * m


# ----------------------------- Pallas kernels ------------------------------


def _stats_kernel(p_ref, w_ref, sum_ref, sq_ref):
    """Per-tile conv GEMM kept in VMEM; emit per-channel partial sum / sum-of-squares.

    Partials are written per grid step (one (8, Cout_pad) block each) instead of
    accumulating into a resident buffer, so the grid axis stays 'parallel'.
    """
    y = jnp.dot(p_ref[...], w_ref[...], preferred_element_type=jnp.float32)
    tm, c = y.shape
    y3 = y.reshape(tm // 8, 8, c)           # (8,128)-tile-aligned regrouping (no copy)
    sum_ref[...] = jnp.sum(y3, axis=0)
    sq_ref[...] = jnp.sum(y3 * y3, axis=0)


def _gemm_affine_relu_kernel(p_ref, w_ref, scale_ref, shift_ref, o_ref, *, relu_f):
    """Fused conv GEMM + BN affine (already folded into scale/shift) + optional ReLU."""
    y = jnp.dot(p_ref[...], w_ref[...], preferred_element_type=jnp.float32)
    out = y * scale_ref[...] + shift_ref[...]
    if relu_f:
        out = jnp.maximum(out, 0.0)
    o_ref[...] = out


# ------------------------------- glue (JAX) --------------------------------


def _im2col_nhwc(x_nhwc, kh, kw, pad, dil):
    """NHWC -> [N*Hout*Wout, kh*kw*Cin] patches (tap-major, channel-minor columns)."""
    N, H, W, C = x_nhwc.shape
    Hout = H + 2 * pad - dil * (kh - 1)
    Wout = W + 2 * pad - dil * (kw - 1)
    xp = jnp.pad(x_nhwc, ((0, 0), (pad, pad), (pad, pad), (0, 0)))
    cols = []
    for i in range(kh):
        for j in range(kw):
            cols.append(xp[:, i * dil:i * dil + Hout, j * dil:j * dil + Wout, :])
    p = jnp.stack(cols, axis=3)             # (N, Hout, Wout, kh*kw, C)
    return p.reshape(N * Hout * Wout, kh * kw * C), Hout, Wout


def conv_bn_relu(x, w, b, gamma, beta, *, pad, dilation=1,
                 bn_f=True, relu_f=True, eps=1e-5, tile_m=1024):
    """Forward of ConvBnRelu.  x: NCHW f32, w: (Cout, Cin, kh, kw), b/gamma/beta: (Cout,)."""
    N, Cin, H, W = x.shape
    Cout, _, kh, kw = w.shape

    # NCHW -> NHWC once (channels-last makes im2col a cheap tap-stack, no 5D transpose).
    x_nhwc = jnp.transpose(x, (0, 2, 3, 1))
    patches, Hout, Wout = _im2col_nhwc(x_nhwc, kh, kw, pad, dilation)
    M, K = patches.shape
    # TODO(synk): im2col is still materialized in HBM (in bf16); a fully fused in-kernel
    # patch extraction (pl.ANY input + kh*kw shifted DMAs) would remove the kh*kw read
    # amplification entirely.

    # Row-tile: multiple of 8 (sublane), no larger than needed for small problems.
    tile_m = min(tile_m, _round_up(M, 8))
    tile_m = _round_up(tile_m, 8)

    # Pad rows to the tile size and channels to a lane multiple (zero padding is exact:
    # zero patch rows x W = 0, zero weight columns produce unused channels).
    M_pad = _round_up(M, tile_m)
    Cout_pad = _round_up(Cout, LANE)
    if M_pad != M:
        patches = jnp.pad(patches, ((0, M_pad - M), (0, 0)))

    # Weight (Cout, Cin, kh, kw) -> (kh, kw, Cin, Cout) -> (K, Cout_pad), matching the
    # tap-major / channel-minor patch column order.
    wmat = jnp.transpose(w, (2, 3, 1, 0)).reshape(K, Cout)
    wmat = jnp.pad(wmat, ((0, 0), (0, Cout_pad - Cout)))

    # bf16 inputs halve HBM traffic and double MXU throughput; accumulation stays f32.
    patches_bf16 = patches.astype(jnp.bfloat16)
    wmat_bf16 = wmat.astype(jnp.bfloat16)

    num_tiles = M_pad // tile_m
    p_spec = pl.BlockSpec((tile_m, K), lambda i: (i, 0))
    w_spec = pl.BlockSpec((K, Cout_pad), lambda i: (0, 0))
    compiler_params = pltpu.CompilerParams(
        dimension_semantics=("parallel",),
        vmem_limit_bytes=_VMEM_LIMIT)

    bias = b.reshape(1, Cout).astype(jnp.float32)
    if bn_f:
        # ---- Pass 1: BN batch-statistic partial sums (y never leaves VMEM) ----
        psum, psq = pl.pallas_call(
            _stats_kernel,
            out_shape=(jax.ShapeDtypeStruct((num_tiles * 8, Cout_pad), jnp.float32),
                       jax.ShapeDtypeStruct((num_tiles * 8, Cout_pad), jnp.float32)),
            grid_spec=pltpu.PrefetchScalarGridSpec(
                num_scalar_prefetch=0,
                grid=(num_tiles,),
                in_specs=[p_spec, w_spec],
                out_specs=[pl.BlockSpec((8, Cout_pad), lambda i: (i, 0)),
                           pl.BlockSpec((8, Cout_pad), lambda i: (i, 0))]),
            compiler_params=compiler_params,
        )(patches_bf16, wmat_bf16)

        # PyTorch BatchNorm2d (training mode): biased variance over (N, H, W) == M rows.
        # Padded rows/channels contribute exactly zero to the partial sums.
        ysum = jnp.sum(psum, axis=0, keepdims=True)            # (1, Cout_pad), f32
        ysq = jnp.sum(psq, axis=0, keepdims=True)
        mean = ysum / M
        var = jnp.maximum(ysq / M - mean * mean, 0.0)          # guard tiny cancellation
        inv_std = lax.rsqrt(var + eps)
        gamma_p = jnp.pad(gamma.reshape(1, Cout).astype(jnp.float32),
                          ((0, 0), (0, Cout_pad - Cout)))
        beta_p = jnp.pad(beta.reshape(1, Cout).astype(jnp.float32),
                         ((0, 0), (0, Cout_pad - Cout)))
        scale = gamma_p * inv_std
        shift = beta_p - mean * scale
        # TODO(synk): running_mean/running_var momentum updates are a training-only side
        # effect with no influence on the forward output; not tracked here.
    else:
        # No BN: identity scale, conv bias folded into the shift -> single fused pass.
        scale = jnp.ones((1, Cout_pad), jnp.float32)
        shift = jnp.pad(bias, ((0, 0), (0, Cout_pad - Cout)))

    # ---- Pass 2: fused conv GEMM + BN affine + ReLU, output written once ----
    out = pl.pallas_call(
        functools.partial(_gemm_affine_relu_kernel, relu_f=relu_f),
        out_shape=jax.ShapeDtypeStruct((M_pad, Cout_pad), jnp.float32),
        grid_spec=pltpu.PrefetchScalarGridSpec(
            num_scalar_prefetch=0,
            grid=(num_tiles,),
            in_specs=[p_spec, w_spec,
                      pl.BlockSpec((1, Cout_pad), lambda i: (0, 0)),
                      pl.BlockSpec((1, Cout_pad), lambda i: (0, 0))],
            out_specs=pl.BlockSpec((tile_m, Cout_pad), lambda i: (i, 0))),
        compiler_params=compiler_params,
    )(patches_bf16, wmat_bf16, scale, shift)

    # Strip padding, [M, Cout] -> (N, Hout, Wout, Cout) -> NCHW (PyTorch layout).
    # TODO(synk): returning NHWC directly would save a full HBM round-trip if the
    # consumer accepts channels-last.
    out = out[:M, :Cout].reshape(N, Hout, Wout, Cout)
    return jnp.transpose(out, (0, 3, 1, 2))


# ------------------------------ reference ----------------------------------


def _reference(x, w, b, gamma, beta, *, pad, dilation, bn_f, relu_f, eps=1e-5):
    y = lax.conv_general_dilated(
        x, w, window_strides=(1, 1),
        padding=((pad, pad), (pad, pad)),
        rhs_dilation=(dilation, dilation),
        dimension_numbers=('NCHW', 'OIHW', 'NCHW'),
        precision=lax.Precision.HIGHEST)
    y = y + b.reshape(1, -1, 1, 1)
    if bn_f:
        mean = y.mean(axis=(0, 2, 3), keepdims=True)
        var = ((y - mean) ** 2).mean(axis=(0, 2, 3), keepdims=True)
        y = (y - mean) * lax.rsqrt(var + eps)
        y = y * gamma.reshape(1, -1, 1, 1) + beta.reshape(1, -1, 1, 1)
    if relu_f:
        y = jnp.maximum(y, 0.0)
    return y


# --------------------------------- main -------------------------------------


if __name__ == "__main__":
    # ConvBnRelu(in_planes=4, out_planes=8, ksize=3, pad=1, dilation=1)
    N, Cin, H, W = 2, 4, 16, 16
    Cout, ksize, pad, dilation = 8, 3, 1, 1

    key = jax.random.PRNGKey(0)
    kx, kw, kb = jax.random.split(key, 3)

    x = jax.random.normal(kx, (N, Cin, H, W), dtype=jnp.float32)

    # Deterministic parameter init (PyTorch-like kaiming-uniform bounds).
    fan_in = Cin * ksize * ksize
    bound = 1.0 / (fan_in ** 0.5)
    w = jax.random.uniform(kw, (Cout, Cin, ksize, ksize), jnp.float32, -bound, bound)
    b = jax.random.uniform(kb, (Cout,), jnp.float32, -bound, bound)
    gamma = jnp.ones((Cout,), jnp.float32)   # BatchNorm2d weight init
    beta = jnp.zeros((Cout,), jnp.float32)   # BatchNorm2d bias init

    out = conv_bn_relu(x, w, b, gamma, beta, pad=pad, dilation=dilation,
                       bn_f=True, relu_f=True)
    out = jax.block_until_ready(out)

    ref = _reference(x, w, b, gamma, beta, pad=pad, dilation=dilation,
                     bn_f=True, relu_f=True)
    assert out.shape == (N, Cout, H, W)
    # Tolerance reflects bf16 MXU operands (f32 accumulation) vs. the f32 reference.
    assert jnp.allclose(out, ref, atol=2e-2, rtol=2e-2), "mismatch vs reference"

    # Also exercise the bn_f=False single-pass path.
    out2 = jax.block_until_ready(
        conv_bn_relu(x, w, b, gamma, beta, pad=pad, dilation=dilation,
                     bn_f=False, relu_f=True))
    ref2 = _reference(x, w, b, gamma, beta, pad=pad, dilation=dilation,
                      bn_f=False, relu_f=True)
    assert jnp.allclose(out2, ref2, atol=2e-2, rtol=2e-2), "mismatch vs reference (no BN)"

    print("KERNEL_OK")
</pallas_src>

<mosaic_0001>
module attributes {stable_mosaic.version = 11 : i64} {
  func.func @_stats_kernel(%arg0: i32, %arg1: memref<512x36xbf16, #tpu.memory_space<vmem>>, %arg2: memref<36x128xbf16, #tpu.memory_space<vmem>>, %arg3: memref<8x128xf32, #tpu.memory_space<vmem>>, %arg4: memref<8x128xf32, #tpu.memory_space<vmem>>) attributes {dimension_semantics = [#tpu.dimension_semantics<parallel>], iteration_bounds = array<i64: 1>, scalar_prefetch = 0 : i64, scratch_operands = 0 : i64, tpu.core_type = #tpu.core_type<tc>, window_params = [{transform_indices = @transform_0, window_bounds = array<i64: 512, 36>}, {pipeline_mode = #tpu.pipeline_mode<synchronous>, transform_indices = @transform_1, window_bounds = array<i64: 36, 128>}, {transform_indices = @transform_2, window_bounds = array<i64: 8, 128>}, {transform_indices = @transform_3, window_bounds = array<i64: 8, 128>}]} {
    %c0 = arith.constant 0 : index
    %c0_0 = arith.constant 0 : index
    %0 = vector.load %arg1[%c0, %c0_0] : memref<512x36xbf16, #tpu.memory_space<vmem>>, vector<512x36xbf16>
    %c0_1 = arith.constant 0 : index
    %c0_2 = arith.constant 0 : index
    %1 = vector.load %arg2[%c0_1, %c0_2] : memref<36x128xbf16, #tpu.memory_space<vmem>>, vector<36x128xbf16>
    %cst = arith.constant dense<0.000000e+00> : vector<512x128xf32>
    %2 = tpu.matmul %0, %1, %cst {dimension_numbers = #tpu.dot_dimension_numbers<[1], [0], [0], [1], [0, 0, 1, 1], [], []>} : vector<512x36xbf16>, vector<36x128xbf16>, vector<512x128xf32> -> vector<512x128xf32>
    %3 = vector.shape_cast %2 : vector<512x128xf32> to vector<64x8x128xf32>
    %cst_3 = arith.constant dense<0.000000e+00> : vector<8x128xf32>
    %4 = vector.multi_reduction <add>, %3, %cst_3 [0] : vector<64x8x128xf32> to vector<8x128xf32>
    %c0_4 = arith.constant 0 : index
    %c0_5 = arith.constant 0 : index
    %5 = vector.load %arg3[%c0_4, %c0_5] : memref<8x128xf32, #tpu.memory_space<vmem>>, vector<8x128xf32>
    tpu.vector_store %arg3[%c0_4, %c0_5], %4 {strides = array<i32>} : memref<8x128xf32, #tpu.memory_space<vmem>>, vector<8x128xf32>,
    %6 = arith.mulf %3, %3 : vector<64x8x128xf32>
    %cst_6 = arith.constant dense<0.000000e+00> : vector<8x128xf32>
    %7 = vector.multi_reduction <add>, %6, %cst_6 [0] : vector<64x8x128xf32> to vector<8x128xf32>
    %c0_7 = arith.constant 0 : index
    %c0_8 = arith.constant 0 : index
    %8 = vector.load %arg4[%c0_7, %c0_8] : memref<8x128xf32, #tpu.memory_space<vmem>>, vector<8x128xf32>
    tpu.vector_store %arg4[%c0_7, %c0_8], %7 {strides = array<i32>} : memref<8x128xf32, #tpu.memory_space<vmem>>, vector<8x128xf32>,
    return
  }
  func.func @transform_0(%arg0: i32) -> (i32, i32) {
    %c0_i32 = arith.constant 0 : i32
    %c0_i32_0 = arith.constant 0 : i32
    return %arg0, %c0_i32 : i32, i32
  }
  func.func @transform_1(%arg0: i32) -> (i32, i32) {
    %c0_i32 = arith.constant 0 : i32
    %c0_i32_0 = arith.constant 0 : i32
    %c0_i32_1 = arith.constant 0 : i32
    return %c0_i32, %c0_i32_0 : i32, i32
  }
  func.func @transform_2(%arg0: i32) -> (i32, i32) {
    %c0_i32 = arith.constant 0 : i32
    %c0_i32_0 = arith.constant 0 : i32
    return %arg0, %c0_i32 : i32, i32
  }
  func.func @transform_3(%arg0: i32) -> (i32, i32) {
    %c0_i32 = arith.constant 0 : i32
    %c0_i32_0 = arith.constant 0 : i32
    return %arg0, %c0_i32 : i32, i32
  }
}

</mosaic_0001>

<bundles_post_ra>
// kernel: tpu_custom_call.1
= control target key start
LH: loop header
LB: loop body
LE: loop exit
PB: predicated region body
PF: predicated region fallthrough
CT: control target
= control target key end

     0   :  { %9 = vsyncpa [#allocation3], 0  ;;  %s1483_s0 = inlined_call_operand.hbm [shape: bf16[512,36], index: 0, kind: input, shape index: {}]   ;;  %s1484_s1 = inlined_call_operand.hbm [shape: bf16[36,128], index: 1, kind: input, shape index: {}]   ;;  %s1485_s2 = inlined_call_operand.hbm [shape: f32[8,128], index: 2, kind: output, shape index: {0}]   ;;  %s1486_s3 = inlined_call_operand.hbm [shape: f32[8,128], index: 3, kind: output, shape index: {1}]  }
   0x1   :  { %10 = vsyncpa [#allocation6], 0 }
   0x2   :  { %11 = vsyncpa [#allocation4], 0 }
   0x3   :  { %12 = vsyncpa [#allocation9], 0  ;;  %s1217_s12 = smov [#allocation2]   ;;  %s1121_s16 = scalar_lea.hbm %s1483_s0, 4096 }
   0x4   :  { %s18_s13 = sshll.u32 %s1217_s12, 4  ;;  %p1122_p0 = scmp.ne.s32.totalorder %s1483_s0, %s1121_s16  ;;  %s19_s13 = int_to_ptr.vmem [resolvable:$true] %s18_s13 }
   0x5   :  { %p1125_p1 = scmp.lt.u32.totalorder %s1121_s16, %s1483_s0 }
   0x7   :  { %p1127_p2 = pnand %p1125_p1, %p1122_p0 }
   0x9   :  { %1130 = shalt.err (!%p1127_p2)
}
   0xa   :  { %s1131_s21 = scalar_lea.vmem %s19_s13, 4096  ;;  %p1136_p4 = scmp.lt.s32.totalorder %s19_s13, %s19_s13 }
   0xb   :  { %p1132_p3 = scmp.ne.s32.totalorder %s19_s13, %s1131_s21  ;;  %p1137_p5 = scmp.lt.s32.totalorder %s1131_s21, %s1131_s21 }
   0xd   :  { %p1138_p6 = por %p1137_p5, %p1136_p4 }
   0xf   :  { %p1139_p7 = pnand %p1138_p6, %p1132_p3 }
  0x11   :  { %1142 = shalt.err (!%p1139_p7)
}
  0x12   :  { %s1218_s22 = smov 64   ;;  %s1219_s23 = smov 4  }
  0x13   :  { %24 = dma.hbm_to_vmem [thread:$0]  %s1483_s0, 4096, %s19_s13, [#allocation3], %s1218_s22, %s1218_s22, %s1219_s23  }
  0x14   :  { %s1220_s26 = smov [#allocation5]   ;;  %s1143_s30 = scalar_lea.hbm %s1484_s1, 320 }
  0x15   :  { %s30_s27 = sshll.u32 %s1220_s26, 4  ;;  %p1144_p8 = scmp.ne.s32.totalorder %s1484_s1, %s1143_s30  ;;  %s31_s27 = int_to_ptr.vmem [resolvable:$true] %s30_s27 }
  0x16   :  { %p1147_p9 = scmp.lt.u32.totalorder %s1143_s30, %s1484_s1 }
  0x18   :  { %p1149_p10 = pnand %p1147_p9, %p1144_p8 }
  0x1a   :  { %1152 = shalt.err (!%p1149_p10)
}
  0x1b   :  { %s1153_s8 = scalar_lea.vmem %s31_s27, 320  ;;  %p1158_p12 = scmp.lt.s32.totalorder %s31_s27, %s31_s27 }
  0x1c   :  { %p1154_p11 = scmp.ne.s32.totalorder %s31_s27, %s1153_s8  ;;  %p1159_p13 = scmp.lt.s32.totalorder %s1153_s8, %s1153_s8 }
  0x1e   :  { %p1160_p0 = por %p1159_p13, %p1158_p12 }
  0x20   :  { %p1161_p1 = pnand %p1160_p0, %p1154_p11 }
  0x22   :  { %1164 = shalt.err (!%p1161_p1)
}
  0x23   :  { %36 = dma.hbm_to_vmem [thread:$0]  %s1484_s1, 320, %s31_s27, [#allocation6], %s1218_s22, %s1218_s22, %s1219_s23  }
  0x24   :  { %1209 = dma.done.wait [#allocation3], 4096  }
  0x25   :  { %1210 = vsyncadd [#allocation3], 4294963200 }
  0x26   :  { %1211 = dma.done.wait [#allocation6], 320  }
  0x27   :  { %1212 = vsyncadd [#allocation6], 4294966976  ;;  %v1086_v0 = vld [vmem:[#allocation5] sm:$0xff]   ;;  %v1087_v1 = vld [vmem:[#allocation5 + $0x8] sm:$0xff]   ;;  %vm288_vm0 = vcmask 293888   ;;  %vm385_vm1 = vcmask 1041408  }
  0x28   :  { %1002 = vmatprep.subr.bf16.mxu0 %v1086_v0  ;;  %v1088_v2 = vld [vmem:[#allocation5 + $0x10] ss:$0 sps:$4 sm:$0x33]   ;;  %v1089_v3 = vld [vmem:[#allocation2] sm:$0xff]   ;;  %1072 = vmatprep.subr.bf16.mxu1 %v1086_v0  ;;  %v1090_v5 = vld [vmem:[#allocation2 + $0x8] sm:$0xff]   ;;  %s1221_s1 = smov [#allocation7]  }
  0x29   :  { %1003 = vmatpush3.bf16.msra.mxu0 %v1086_v0  ;;  %1075 = vmatpush3.bf16.msra.mxu1 %v1086_v0  ;;  %v387_v4 = vsel %vm385_vm1, %v1088_v2, 0  ;;  %v1091_v6 = vld [vmem:[#allocation2 + $0x10] sm:$0xff]   ;;  %v1092_v7 = vld [vmem:[#allocation2 + $0x18] sm:$0xff]   ;;  %v1093_v8 = vld [vmem:[#allocation2 + $0x20] sm:$0xff]   ;;  %s876_s10 = sshll.u32 %s1221_s1, 4  ;;  %s1222_s11 = smov [#allocation8]   ;;  %s877_s10 = int_to_ptr.vmem [resolvable:$true] %s876_s10 }
  0x2a   :  { %1004 = vmatprep.subr.bf16.mxu0 %v1087_v1  ;;  %1008 = vmatprep.mubr.msk.bf16.mxu0 %vm288_vm0, %v1089_v3  ;;  %v1105_v9 = vld [vmem:[#allocation2 + $0x80] sm:$0xff]   ;;  %v1106_v10 = vld [vmem:[#allocation2 + $0x88] sm:$0xff]   ;;  %v1107_v11 = vld [vmem:[#allocation2 + $0x90] sm:$0xff]   ;;  %s886_s12 = sshll.u32 %s1222_s11, 4  ;;  %s1165_s13 = scalar_lea.vmem %s877_s10, 128  ;;  %s887_s12 = int_to_ptr.vmem [resolvable:$true] %s886_s12 }
  0x2b   :  { %1073 = vmatprep.subr.bf16.mxu1 %v1087_v1  ;;  %1040 = vmatprep.mubr.msk.bf16.mxu1 %vm288_vm0, %v1105_v9  ;;  %v1094_v12 = vld [vmem:[#allocation2 + $0x28] sm:$0xff]   ;;  %v1095_v13 = vld [vmem:[#allocation2 + $0x30] sm:$0xff]   ;;  %v1108_v14 = vld [vmem:[#allocation2 + $0x98] sm:$0xff]   ;;  %p1166_p2 = scmp.ne.s32.totalorder %s877_s10, %s1165_s13  ;;  %p1170_p3 = scmp.lt.s32.totalorder %s877_s10, %s877_s10 }
  0x2c   :  { %v1109_v15 = vld [vmem:[#allocation2 + $0xa0] sm:$0xff]   ;;  %v1096_v16 = vld [vmem:[#allocation2 + $0x38] sm:$0xff]   ;;  %v1110_v17 = vld [vmem:[#allocation2 + $0xa8] sm:$0xff]   ;;  %p1171_p4 = scmp.lt.s32.totalorder %s1165_s13, %s1165_s13 }
  0x2d   :  { %1005 = vmatpush3.bf16.msra.mxu0 %v1087_v1  ;;  %1076 = vmatpush3.bf16.msra.mxu1 %v1087_v1  ;;  %v1097_v18 = vld [vmem:[#allocation2 + $0x40] sm:$0xff]   ;;  %v1111_v19 = vld [vmem:[#allocation2 + $0xb0] sm:$0xff]   ;;  %v1098_v20 = vld [vmem:[#allocation2 + $0x48] sm:$0xff]  }
  0x2e   :  { %1078 = vmatprep.subr.msk.bf16.mxu0 %vm385_vm1, %v1088_v2  ;;  %1079 = vmatprep.subr.msk.bf16.mxu1 %vm385_vm1, %v1088_v2  ;;  %v1112_v21 = vld [vmem:[#allocation2 + $0xb8] sm:$0xff]   ;;  %v1099_v22 = vld [vmem:[#allocation2 + $0x50] sm:$0xff]   ;;  %v1113_v23 = vld [vmem:[#allocation2 + $0xc0] sm:$0xff]   ;;  %p1172_p5 = por %p1171_p4, %p1170_p3 }
  0x2f   :  { %v1100_v24 = vld [vmem:[#allocation2 + $0x58] sm:$0xff]   ;;  %v1114_v25 = vld [vmem:[#allocation2 + $0xc8] sm:$0xff]   ;;  %v1101_v26 = vld [vmem:[#allocation2 + $0x60] sm:$0xff]  }
  0x30   :  { %v1115_v27 = vld [vmem:[#allocation2 + $0xd0] sm:$0xff]   ;;  %v1102_v28 = vld [vmem:[#allocation2 + $0x68] sm:$0xff]   ;;  %v1116_v29 = vld [vmem:[#allocation2 + $0xd8] sm:$0xff]   ;;  %p1173_p6 = pnand %p1172_p5, %p1166_p2 }
  0x31   :  { %1007 = vmatpush3.bf16.msra.mxu0 %v387_v4  ;;  %1077 = vmatpush3.bf16.msra.mxu1 %v387_v4  ;;  %v1103_v30 = vld [vmem:[#allocation2 + $0x70] sm:$0xff]   ;;  %v1117_v31 = vld [vmem:[#allocation2 + $0xe0] sm:$0xff]   ;;  %v1104_v32 = vld [vmem:[#allocation2 + $0x78] sm:$0xff]  }
  0x32   :  { %v1118_v33 = vld [vmem:[#allocation2 + $0xe8] sm:$0xff]   ;;  %v1119_v34 = vld [vmem:[#allocation2 + $0xf0] sm:$0xff]   ;;  %v1120_v35 = vld [vmem:[#allocation2 + $0xf8] sm:$0xff]  }
  0x34   :  { %1009 = vmatmul.mubr.msk.bf16.vlgmr.msra.gmra.mrb[0].mxu0 %vm288_vm0, %v1090_v5  ;;  %1041 = vmatmul.mubr.msk.bf16.vlgmr.msra.gmra.mrb[0].mxu1 %vm288_vm0, %v1106_v10 }
  0x35   :  { %1012 = vmatprep.mubr.msk.bf16.mxu0 %vm288_vm0, %v1091_v6  ;;  %1044 = vmatprep.mubr.msk.bf16.mxu1 %vm288_vm0, %v1107_v11 }
  0x3c   :  { %1013 = vmatmul.mubr.msk.bf16.gmra.mrb[4].mxu0 %vm288_vm0, %v1092_v7  ;;  %1045 = vmatmul.mubr.msk.bf16.gmra.mrb[4].mxu1 %vm288_vm0, %v1108_v14 }
  0x3d   :  { %1016 = vmatprep.mubr.msk.bf16.mxu0 %vm288_vm0, %v1093_v8  ;;  %1048 = vmatprep.mubr.msk.bf16.mxu1 %vm288_vm0, %v1109_v15 }
  0x44   :  { %1017 = vmatmul.mubr.msk.bf16.gmra.mrb[8].mxu0 %vm288_vm0, %v1094_v12  ;;  %1049 = vmatmul.mubr.msk.bf16.gmra.mrb[8].mxu1 %vm288_vm0, %v1110_v17 }
  0x45   :  { %1020 = vmatprep.mubr.msk.bf16.mxu0 %vm288_vm0, %v1095_v13  ;;  %1052 = vmatprep.mubr.msk.bf16.mxu1 %vm288_vm0, %v1111_v19 }
  0x4c   :  { %1021 = vmatmul.mubr.msk.bf16.gmra.mrb[12].mxu0 %vm288_vm0, %v1096_v16  ;;  %1053 = vmatmul.mubr.msk.bf16.gmra.mrb[12].mxu1 %vm288_vm0, %v1112_v21 }
  0x4d   :  { %1024 = vmatprep.mubr.msk.bf16.mxu0 %vm288_vm0, %v1097_v18  ;;  %1056 = vmatprep.mubr.msk.bf16.mxu1 %vm288_vm0, %v1113_v23 }
  0x54   :  { %1025 = vmatmul.mubr.msk.bf16.gmra.mrb[16].mxu0 %vm288_vm0, %v1098_v20  ;;  %1057 = vmatmul.mubr.msk.bf16.gmra.mrb[16].mxu1 %vm288_vm0, %v1114_v25 }
  0x55   :  { %1028 = vmatprep.mubr.msk.bf16.mxu0 %vm288_vm0, %v1099_v22  ;;  %1060 = vmatprep.mubr.msk.bf16.mxu1 %vm288_vm0, %v1115_v27 }
  0x5c   :  { %1029 = vmatmul.mubr.msk.bf16.gmra.mrb[20].mxu0 %vm288_vm0, %v1100_v24  ;;  %1061 = vmatmul.mubr.msk.bf16.gmra.mrb[20].mxu1 %vm288_vm0, %v1116_v29 }
  0x5d   :  { %1032 = vmatprep.mubr.msk.bf16.mxu0 %vm288_vm0, %v1101_v26  ;;  %1064 = vmatprep.mubr.msk.bf16.mxu1 %vm288_vm0, %v1117_v31 }
  0x64   :  { %1033 = vmatmul.mubr.msk.bf16.gmra.mrb[24].mxu0 %vm288_vm0, %v1102_v28  ;;  %1065 = vmatmul.mubr.msk.bf16.gmra.mrb[24].mxu1 %vm288_vm0, %v1118_v33 }
  0x65   :  { %1036 = vmatprep.mubr.msk.bf16.mxu0 %vm288_vm0, %v1103_v30  ;;  %1068 = vmatprep.mubr.msk.bf16.mxu1 %vm288_vm0, %v1119_v34 }
  0x6c   :  { %1037 = vmatmul.mubr.msk.bf16.gmra.mrb[28].mxu0 %vm288_vm0, %v1104_v32  ;;  %1069 = vmatmul.mubr.msk.bf16.gmra.mrb[28].mxu1 %vm288_vm0, %v1120_v35 }
 0x107   :  { %v1010_v36 = vpop.f32.mrb[0].mxu0  ;;  %v1299_v50 = vpop.f32.mrb[0].mxu1 }
 0x108   :  { %v423_v37 = vpop.f32.mrb[1].mxu0  ;;  %v744_v43 = vmul.f32 %v1010_v36, %v1010_v36  ;;  %v1301_v52 = vpop.f32.mrb[1].mxu1 }
 0x109   :  { %v1011_v38 = vpop.f32.mrb[2].mxu0  ;;  %v742_v40 = vmul.f32 %v423_v37, %v423_v37  ;;  %v1303_v57 = vpop.f32.mrb[2].mxu1 }
 0x10a   :  { %v426_v39 = vpop.f32.mrb[3].mxu0  ;;  %v745_v46 = vmul.f32 %v1011_v38, %v1011_v38  ;;  %v1305_v59 = vpop.f32.mrb[3].mxu1 }
 0x10b   :  { %v678_v41 = vadd.f32 %v426_v39, %v423_v37  ;;  %v743_v42 = vmul.f32 %v426_v39, %v426_v39 }
 0x10d   :  { %v679_v44 = vadd.f32 %v1010_v36, %v678_v41  ;;  %v806_v45 = vadd.f32 %v743_v42, %v742_v40 }
 0x10f   :  { %v807_v47 = vadd.f32 %v806_v45, %v744_v43  ;;  %v1014_v48 = vpop.f32.mrb[4].mxu0  ;;  %v680_v49 = vadd.f32 %v1011_v38, %v679_v44  ;;  %v1307_v6 = vpop.f32.mrb[4].mxu1 }
 0x110   :  { %v439_v51 = vpop.f32.mrb[5].mxu0  ;;  %v748_v63 = vmul.f32 %v1014_v48, %v1014_v48  ;;  %v1309_v8 = vpop.f32.mrb[5].mxu1 }
 0x111   :  { %v681_v53 = vadd.f32 %v680_v49, %v439_v51  ;;  %v746_v54 = vmul.f32 %v439_v51, %v439_v51  ;;  %v808_v55 = vadd.f32 %v807_v47, %v745_v46  ;;  %v1015_v56 = vpop.f32.mrb[6].mxu0  ;;  %v1311_v13 = vpop.f32.mrb[6].mxu1 }
 0x112   :  { %v442_v58 = vpop.f32.mrb[7].mxu0  ;;  %v749_v2 = vmul.f32 %v1015_v56, %v1015_v56  ;;  %v1313_v15 = vpop.f32.mrb[7].mxu1 }
 0x113   :  { %v809_v60 = vadd.f32 %v808_v55, %v746_v54  ;;  %v682_v61 = vadd.f32 %v681_v53, %v442_v58  ;;  %v747_v62 = vmul.f32 %v442_v58, %v442_v58 }
 0x115   :  { %v683_v0 = vadd.f32 %v1014_v48, %v682_v61  ;;  %v810_v1 = vadd.f32 %v809_v60, %v747_v62 }
 0x117   :  { %v811_v3 = vadd.f32 %v810_v1, %v748_v63  ;;  %v1018_v4 = vpop.f32.mrb[8].mxu0  ;;  %v684_v5 = vadd.f32 %v1015_v56, %v683_v0  ;;  %v1315_v26 = vpop.f32.mrb[8].mxu1 }
 0x118   :  { %v455_v7 = vpop.f32.mrb[9].mxu0  ;;  %v752_v19 = vmul.f32 %v1018_v4, %v1018_v4  ;;  %v1317_v28 = vpop.f32.mrb[9].mxu1 }
 0x119   :  { %v685_v9 = vadd.f32 %v684_v5, %v455_v7  ;;  %v750_v10 = vmul.f32 %v455_v7, %v455_v7  ;;  %v812_v11 = vadd.f32 %v811_v3, %v749_v2  ;;  %v1019_v12 = vpop.f32.mrb[10].mxu0  ;;  %v1319_v33 = vpop.f32.mrb[10].mxu1 }
 0x11a   :  { %v458_v14 = vpop.f32.mrb[11].mxu0  ;;  %v753_v22 = vmul.f32 %v1019_v12, %v1019_v12  ;;  %v1321_v35 = vpop.f32.mrb[11].mxu1 }
 0x11b   :  { %v813_v16 = vadd.f32 %v812_v11, %v750_v10  ;;  %v686_v17 = vadd.f32 %v685_v9, %v458_v14  ;;  %v751_v18 = vmul.f32 %v458_v14, %v458_v14 }
 0x11d   :  { %v687_v20 = vadd.f32 %v1018_v4, %v686_v17  ;;  %v814_v21 = vadd.f32 %v813_v16, %v751_v18 }
 0x11f   :  { %v815_v23 = vadd.f32 %v814_v21, %v752_v19  ;;  %v1022_v24 = vpop.f32.mrb[12].mxu0  ;;  %v688_v25 = vadd.f32 %v1019_v12, %v687_v20  ;;  %v1323_v46 = vpop.f32.mrb[12].mxu1 }
 0x120   :  { %v471_v27 = vpop.f32.mrb[13].mxu0  ;;  %v756_v39 = vmul.f32 %v1022_v24, %v1022_v24  ;;  %v1325_v48 = vpop.f32.mrb[13].mxu1 }
 0x121   :  { %v689_v29 = vadd.f32 %v688_v25, %v471_v27  ;;  %v754_v30 = vmul.f32 %v471_v27, %v471_v27  ;;  %v816_v31 = vadd.f32 %v815_v23, %v753_v22  ;;  %v1023_v32 = vpop.f32.mrb[14].mxu0  ;;  %v1327_v55 = vpop.f32.mrb[14].mxu1 }
 0x122   :  { %v474_v34 = vpop.f32.mrb[15].mxu0  ;;  %v757_v42 = vmul.f32 %v1023_v32, %v1023_v32  ;;  %v1329_v58 = vpop.f32.mrb[15].mxu1 }
 0x123   :  { %v817_v36 = vadd.f32 %v816_v31, %v754_v30  ;;  %v690_v37 = vadd.f32 %v689_v29, %v474_v34  ;;  %v755_v38 = vmul.f32 %v474_v34, %v474_v34 }
 0x125   :  { %v691_v40 = vadd.f32 %v1022_v24, %v690_v37  ;;  %v818_v41 = vadd.f32 %v817_v36, %v755_v38 }
 0x127   :  { %v819_v43 = vadd.f32 %v818_v41, %v756_v39  ;;  %v1026_v44 = vpop.f32.mrb[16].mxu0  ;;  %v692_v45 = vadd.f32 %v1023_v32, %v691_v40  ;;  %v1331_v7 = vpop.f32.mrb[16].mxu1 }
 0x128   :  { %v487_v47 = vpop.f32.mrb[17].mxu0  ;;  %v760_v63 = vmul.f32 %v1026_v44, %v1026_v44  ;;  %v1333_v10 = vpop.f32.mrb[17].mxu1 }
 0x129   :  { %v693_v49 = vadd.f32 %v692_v45, %v487_v47  ;;  %v758_v51 = vmul.f32 %v487_v47, %v487_v47  ;;  %v820_v53 = vadd.f32 %v819_v43, %v757_v42  ;;  %v1027_v54 = vpop.f32.mrb[18].mxu0  ;;  %v1335_v17 = vpop.f32.mrb[18].mxu1 }
 0x12a   :  { %v490_v56 = vpop.f32.mrb[19].mxu0  ;;  %v761_v2 = vmul.f32 %v1027_v54, %v1027_v54  ;;  %v1337_v19 = vpop.f32.mrb[19].mxu1 }
 0x12b   :  { %v821_v60 = vadd.f32 %v820_v53, %v758_v51  ;;  %v694_v61 = vadd.f32 %v693_v49, %v490_v56  ;;  %v759_v62 = vmul.f32 %v490_v56, %v490_v56 }
 0x12d   :  { %v695_v0 = vadd.f32 %v1026_v44, %v694_v61  ;;  %v822_v1 = vadd.f32 %v821_v60, %v759_v62 }
 0x12f   :  { %v823_v3 = vadd.f32 %v822_v1, %v760_v63  ;;  %v1030_v4 = vpop.f32.mrb[20].mxu0  ;;  %v696_v5 = vadd.f32 %v1027_v54, %v695_v0  ;;  %v1339_v32 = vpop.f32.mrb[20].mxu1 }
 0x130   :  { %v503_v9 = vpop.f32.mrb[21].mxu0  ;;  %v764_v23 = vmul.f32 %v1030_v4, %v1030_v4  ;;  %v1341_v36 = vpop.f32.mrb[21].mxu1 }
 0x131   :  { %v697_v11 = vadd.f32 %v696_v5, %v503_v9  ;;  %v762_v12 = vmul.f32 %v503_v9, %v503_v9  ;;  %v824_v14 = vadd.f32 %v823_v3, %v761_v2  ;;  %v1031_v16 = vpop.f32.mrb[22].mxu0  ;;  %v1343_v41 = vpop.f32.mrb[22].mxu1 }
 0x132   :  { %v506_v18 = vpop.f32.mrb[23].mxu0  ;;  %v765_v27 = vmul.f32 %v1031_v16, %v1031_v16  ;;  %v1345_v43 = vpop.f32.mrb[23].mxu1 }
 0x133   :  { %v825_v20 = vadd.f32 %v824_v14, %v762_v12  ;;  %v698_v21 = vadd.f32 %v697_v11, %v506_v18  ;;  %v763_v22 = vmul.f32 %v506_v18, %v506_v18 }
 0x135   :  { %v699_v24 = vadd.f32 %v1030_v4, %v698_v21  ;;  %v826_v25 = vadd.f32 %v825_v20, %v763_v22 }
 0x137   :  { %v827_v29 = vadd.f32 %v826_v25, %v764_v23  ;;  %v1034_v30 = vpop.f32.mrb[24].mxu0  ;;  %v700_v31 = vadd.f32 %v1031_v16, %v699_v24  ;;  %v1347_v62 = vpop.f32.mrb[24].mxu1  ;;  %v774_v25 = vmul.f32 %v1301_v52, %v1301_v52 }
 0x138   :  { %v519_v34 = vpop.f32.mrb[25].mxu0  ;;  %v768_v49 = vmul.f32 %v1034_v30, %v1034_v30  ;;  %v1349_v0 = vpop.f32.mrb[25].mxu1 }
 0x139   :  { %v701_v37 = vadd.f32 %v700_v31, %v519_v34  ;;  %v766_v38 = vmul.f32 %v519_v34, %v519_v34  ;;  %v828_v39 = vadd.f32 %v827_v29, %v765_v27  ;;  %v1035_v40 = vpop.f32.mrb[26].mxu0  ;;  %v1351_v5 = vpop.f32.mrb[26].mxu1 }
 0x13a   :  { %v522_v42 = vpop.f32.mrb[27].mxu0  ;;  %v769_v54 = vmul.f32 %v1035_v40, %v1035_v40  ;;  %v1353_v11 = vpop.f32.mrb[27].mxu1 }
 0x13b   :  { %v829_v44 = vadd.f32 %v828_v39, %v766_v38  ;;  %v702_v45 = vadd.f32 %v701_v37, %v522_v42  ;;  %v767_v47 = vmul.f32 %v522_v42, %v522_v42  ;;  %v776_v42 = vmul.f32 %v1299_v50, %v1299_v50 }
 0x13d   :  { %v703_v51 = vadd.f32 %v1034_v30, %v702_v45  ;;  %v830_v53 = vadd.f32 %v829_v44, %v767_v47 }
 0x13f   :  { %v831_v56 = vadd.f32 %v830_v53, %v768_v49  ;;  %v1038_v60 = vpop.f32.mrb[28].mxu0  ;;  %v704_v61 = vadd.f32 %v1035_v40, %v703_v51  ;;  %v1357_v27 = vpop.f32.mrb[28].mxu1  ;;  %v775_v40 = vmul.f32 %v1305_v59, %v1305_v59  ;;  %v778_v51 = vmul.f32 %v1309_v8, %v1309_v8 }
 0x140   :  { %v535_v63 = vpop.f32.mrb[29].mxu0  ;;  %v772_v18 = vmul.f32 %v1038_v60, %v1038_v60  ;;  %v1359_v29 = vpop.f32.mrb[29].mxu1 }
 0x141   :  { %v705_v1 = vadd.f32 %v704_v61, %v535_v63  ;;  %v770_v2 = vmul.f32 %v535_v63, %v535_v63  ;;  %v832_v3 = vadd.f32 %v831_v56, %v769_v54  ;;  %v1039_v4 = vpop.f32.mrb[30].mxu0  ;;  %v1362_v34 = vpop.f32.mrb[30].mxu1 }
 0x142   :  { %v538_v9 = vpop.f32.mrb[31].mxu0  ;;  %v773_v22 = vmul.f32 %v1039_v4, %v1039_v4  ;;  %v1364_v37 = vpop.f32.mrb[31].mxu1 }
 0x143   :  { %v833_v12 = vadd.f32 %v832_v3, %v770_v2  ;;  %v706_v14 = vadd.f32 %v705_v1, %v538_v9  ;;  %v771_v16 = vmul.f32 %v538_v9, %v538_v9 }
 0x145   :  { %v707_v20 = vadd.f32 %v1038_v60, %v706_v14  ;;  %v834_v21 = vadd.f32 %v833_v12, %v771_v16  ;;  %v779_v60 = vmul.f32 %v1313_v15, %v1313_v15  ;;  %v783_v12 = vmul.f32 %v1321_v35, %v1321_v35 }
 0x147   :  { %v835_v23 = vadd.f32 %v834_v21, %v772_v18  ;;  %v708_v24 = vadd.f32 %v1039_v4, %v707_v20 }
 0x149   :  { %v709_v30 = vadd.f32 %v708_v24, %v1301_v52  ;;  %v836_v31 = vadd.f32 %v835_v23, %v773_v22  ;;  %v777_v52 = vmul.f32 %v1303_v57, %v1303_v57  ;;  %v787_v24 = vmul.f32 %v1329_v58, %v1329_v58 }
 0x14b   :  { %v837_v38 = vadd.f32 %v836_v31, %v774_v25  ;;  %v710_v39 = vadd.f32 %v709_v30, %v1305_v59 }
 0x14d   :  { %v711_v44 = vadd.f32 %v1299_v50, %v710_v39  ;;  %v838_v45 = vadd.f32 %v837_v38, %v775_v40  ;;  %v780_v50 = vmul.f32 %v1307_v6, %v1307_v6 }
 0x14f   :  { %v839_v47 = vadd.f32 %v838_v45, %v776_v42  ;;  %v712_v49 = vadd.f32 %v1303_v57, %v711_v44  ;;  %v781_v57 = vmul.f32 %v1311_v13, %v1311_v13  ;;  %v791_v44 = vmul.f32 %v1337_v19, %v1337_v19 }
 0x151   :  { %v713_v53 = vadd.f32 %v712_v49, %v1309_v8  ;;  %v840_v54 = vadd.f32 %v839_v47, %v777_v52  ;;  %v782_v8 = vmul.f32 %v1317_v28, %v1317_v28 }
 0x153   :  { %v841_v56 = vadd.f32 %v840_v54, %v778_v51  ;;  %v714_v59 = vadd.f32 %v713_v53, %v1313_v15 }
 0x155   :  { %v715_v61 = vadd.f32 %v1307_v6, %v714_v59  ;;  %v842_v63 = vadd.f32 %v841_v56, %v779_v60  ;;  %v784_v6 = vmul.f32 %v1315_v26, %v1315_v26  ;;  %v795_v56 = vmul.f32 %v1345_v43, %v1345_v43 }
 0x157   :  { %v843_v1 = vadd.f32 %v842_v63, %v780_v50  ;;  %v716_v2 = vadd.f32 %v1311_v13, %v715_v61  ;;  %v785_v13 = vmul.f32 %v1319_v33, %v1319_v33 }
 0x159   :  { %v717_v3 = vadd.f32 %v716_v2, %v1317_v28  ;;  %v844_v4 = vadd.f32 %v843_v1, %v781_v57  ;;  %v786_v28 = vmul.f32 %v1325_v48, %v1325_v48  ;;  %v799_v2 = vmul.f32 %v1353_v11, %v1353_v11 }
 0x15b   :  { %v845_v9 = vadd.f32 %v844_v4, %v782_v8  ;;  %v718_v15 = vadd.f32 %v717_v3, %v1321_v35 }
 0x15d   :  { %v719_v14 = vadd.f32 %v1315_v26, %v718_v15  ;;  %v846_v16 = vadd.f32 %v845_v9, %v783_v12  ;;  %v788_v26 = vmul.f32 %v1323_v46, %v1323_v46 }
 0x15f   :  { %v847_v18 = vadd.f32 %v846_v16, %v784_v6  ;;  %v720_v20 = vadd.f32 %v1319_v33, %v719_v14  ;;  %v789_v33 = vmul.f32 %v1327_v55, %v1327_v55  ;;  %v803_v14 = vmul.f32 %v1364_v37, %v1364_v37 }
 0x161   :  { %v721_v21 = vadd.f32 %v720_v20, %v1325_v48  ;;  %v848_v22 = vadd.f32 %v847_v18, %v785_v13  ;;  %v790_v48 = vmul.f32 %v1333_v10, %v1333_v10 }
 0x163   :  { %v849_v23 = vadd.f32 %v848_v22, %v786_v28  ;;  %v722_v35 = vadd.f32 %v721_v21, %v1329_v58 }
 0x165   :  { %v723_v25 = vadd.f32 %v1323_v46, %v722_v35  ;;  %v850_v30 = vadd.f32 %v849_v23, %v787_v24  ;;  %v792_v46 = vmul.f32 %v1331_v7, %v1331_v7 }
 0x167   :  { %v851_v31 = vadd.f32 %v850_v30, %v788_v26  ;;  %v724_v38 = vadd.f32 %v1327_v55, %v723_v25  ;;  %v793_v55 = vmul.f32 %v1335_v17, %v1335_v17 }
 0x169   :  { %v725_v39 = vadd.f32 %v724_v38, %v1333_v10  ;;  %v852_v40 = vadd.f32 %v851_v31, %v789_v33  ;;  %v794_v10 = vmul.f32 %v1341_v36, %v1341_v36 }
 0x16b   :  { %v853_v42 = vadd.f32 %v852_v40, %v790_v48  ;;  %v726_v58 = vadd.f32 %v725_v39, %v1337_v19 }
 0x16d   :  { %v727_v45 = vadd.f32 %v1331_v7, %v726_v58  ;;  %v854_v52 = vadd.f32 %v853_v42, %v791_v44  ;;  %v796_v7 = vmul.f32 %v1339_v32, %v1339_v32 }
 0x16f   :  { %v855_v47 = vadd.f32 %v854_v52, %v792_v46  ;;  %v728_v49 = vadd.f32 %v1335_v17, %v727_v45  ;;  %v797_v17 = vmul.f32 %v1343_v41, %v1343_v41 }
 0x171   :  { %v729_v51 = vadd.f32 %v728_v49, %v1341_v36  ;;  %v856_v53 = vadd.f32 %v855_v47, %v793_v55  ;;  %v798_v36 = vmul.f32 %v1349_v0, %v1349_v0 }
 0x173   :  { %v857_v54 = vadd.f32 %v856_v53, %v794_v10  ;;  %v730_v19 = vadd.f32 %v729_v51, %v1345_v43 }
 0x175   :  { %v731_v59 = vadd.f32 %v1339_v32, %v730_v19  ;;  %v858_v60 = vadd.f32 %v857_v54, %v795_v56  ;;  %v800_v32 = vmul.f32 %v1347_v62, %v1347_v62 }
 0x177   :  { %v859_v50 = vadd.f32 %v858_v60, %v796_v7  ;;  %v732_v61 = vadd.f32 %v1343_v41, %v731_v59  ;;  %v801_v41 = vmul.f32 %v1351_v5, %v1351_v5 }
 0x179   :  { %v733_v63 = vadd.f32 %v732_v61, %v1349_v0  ;;  %v860_v57 = vadd.f32 %v859_v50, %v797_v17  ;;  %v802_v0 = vmul.f32 %v1359_v29, %v1359_v29 }
 0x17b   :  { %v861_v1 = vadd.f32 %v860_v57, %v798_v36  ;;  %v734_v43 = vadd.f32 %v733_v63, %v1353_v11 }
 0x17d   :  { %v735_v8 = vadd.f32 %v1347_v62, %v734_v43  ;;  %v862_v3 = vadd.f32 %v861_v1, %v799_v2  ;;  %v804_v62 = vmul.f32 %v1357_v27, %v1357_v27 }
 0x17f   :  { %v863_v4 = vadd.f32 %v862_v3, %v800_v32  ;;  %v736_v9 = vadd.f32 %v1351_v5, %v735_v8 }
 0x181   :  { %v737_v15 = vadd.f32 %v736_v9, %v1359_v29  ;;  %v864_v12 = vadd.f32 %v863_v4, %v801_v41  ;;  %v805_v29 = vmul.f32 %v1362_v34, %v1362_v34 }
 0x183   :  { %v865_v6 = vadd.f32 %v864_v12, %v802_v0  ;;  %v738_v11 = vadd.f32 %v737_v15, %v1364_v37 }
 0x185   :  { %v739_v16 = vadd.f32 %v1357_v27, %v738_v11  ;;  %v866_v5 = vadd.f32 %v865_v6, %v803_v14 }
 0x187   :  { %v867_v13 = vadd.f32 %v866_v5, %v804_v62  ;;  %v740_v18 = vadd.f32 %v1362_v34, %v739_v16 }
 0x189   :  { %741 = vst [vmem:[#allocation7] sm:$0xff] %v740_v18  ;;  %v868_v20 = vadd.f32 %v867_v13, %v805_v29 }
 0x18a   :  { %1176 = shalt.err (!%p1173_p6)
}
 0x18b   :  { %s1177_s16 = scalar_lea.hbm %s1485_s2, 128 }
 0x18c   :  { %p1178_p7 = scmp.ne.s32.totalorder %s1485_s2, %s1177_s16  ;;  %p1181_p8 = scmp.lt.u32.totalorder %s1177_s16, %s1485_s2 }
 0x18e   :  { %p1183_p9 = pnand %p1181_p8, %p1178_p7 }
 0x190   :  { %1186 = shalt.err (!%p1183_p9)
}
 0x191   :  { %879 = dma.vmem_to_hbm [thread:$0]  %s877_s10, 128, %s1485_s2, [#allocation4]   ;;  %869 = vst [vmem:[#allocation8] sm:$0xff] %v868_v20 }
 0x192   :  { %s1187_s23 = scalar_lea.vmem %s887_s12, 128  ;;  %p1192_p11 = scmp.lt.s32.totalorder %s887_s12, %s887_s12 }
 0x193   :  { %p1188_p10 = scmp.ne.s32.totalorder %s887_s12, %s1187_s23  ;;  %p1193_p12 = scmp.lt.s32.totalorder %s1187_s23, %s1187_s23 }
 0x195   :  { %p1194_p13 = por %p1193_p12, %p1192_p11 }
 0x197   :  { %p1195_p0 = pnand %p1194_p13, %p1188_p10 }
 0x199   :  { %1198 = shalt.err (!%p1195_p0)
}
 0x19a   :  { %s1199_s26 = scalar_lea.hbm %s1486_s3, 128 }
 0x19b   :  { %p1200_p1 = scmp.ne.s32.totalorder %s1486_s3, %s1199_s26  ;;  %p1203_p2 = scmp.lt.u32.totalorder %s1199_s26, %s1486_s3 }
 0x19d   :  { %p1205_p3 = pnand %p1203_p2, %p1200_p1 }
 0x19f   :  { %1208 = shalt.err (!%p1205_p3)
}
 0x1a0   :  { %889 = dma.vmem_to_hbm [thread:$0]  %s887_s12, 128, %s1486_s3, [#allocation9]  }
 0x1a1   :  { %1213 = dma.done.wait [#allocation4], 128  }
 0x1a2   :  { %1214 = vsyncadd [#allocation4], 4294967168 }
 0x1a3   :  { %1215 = dma.done.wait [#allocation9], 128  }
 0x1a4   :  { %1216 = vsyncadd [#allocation9], 4294967168 }
 0x1a5   :  { %896 = vsyncpa [#allocation3], 1 }
 0x1a6   :  { %897 = vsyncpa [#allocation6], 1 }
 0x1a7   :  { %898 = vsyncpa [#allocation4], 1 }
 0x1a8   :  { %899 = vsyncpa [#allocation9], 1 }

</bundles_post_ra>
